<compile_context>
chip_gen: v5e
topology: v5e:2x2
jax: 0.10.0
libtpu: 0.0.40
codegen_flags: <defaults>
</compile_context>

<pallas_src>
import numpy as np
import jax
import jax.numpy as jnp
from jax.experimental import pallas as pl
from jax.experimental.pallas import tpu as pltpu


# ----------------------------- Pallas kernels --------------------------------
def _make_ctm_kernel_const(schedule, cdtype):
    """Fused reverse-diffusion sampler, schedule baked as immediates.

    Ref layout (per grid block, spatial on lanes):
      x_ref   : VMEM (C, TM)   noisy input tile
      w1t_ref : VMEM (HID, C)  first 1x1-conv weight, transposed
      b1_ref  : VMEM (HID, 1)  first bias (f32)
      wt_ref  : VMEM (HID, 1)  sigma-conditioning vector (f32)
      w2t_ref : VMEM (C, HID)  second 1x1-conv weight, transposed
      b2_ref  : VMEM (C, 1)    second bias (f32)
      o_ref   : VMEM (C, TM)   output tile (written once, after the loop)
    """

    def kernel(x_ref, w1t_ref, b1_ref, wt_ref, w2t_ref, b2_ref, o_ref):
        w1t = w1t_ref[...].astype(cdtype)      # (HID, C)
        w2t = w2t_ref[...].astype(cdtype)      # (C, HID)
        b1 = b1_ref[...]                       # (HID, 1) f32
        wt = wt_ref[...]                       # (HID, 1) f32
        b2 = b2_ref[...]                       # (C, 1)  f32

        # Register-carried iterate (no per-step VMEM round trips).
        x = x_ref[...].astype(jnp.float32)     # (C, TM)

        for sigma, coeff in schedule:          # Python floats -> immediates
            # Fold sigma conditioning once per step (tiny (HID,1) vector).
            bias = (b1 + sigma * wt).astype(cdtype)

            # First 1x1-conv (K = C): MXU, f32 accumulation.
            h = jnp.dot(w1t, x.astype(cdtype),
                        preferred_element_type=jnp.float32)
            h = h.astype(cdtype) + bias                         # (HID, TM)
            h = jax.nn.gelu(h, approximate=True)

            # Second 1x1-conv (K = HID): MXU, f32 accumulation.
            score = jnp.dot(w2t, h, preferred_element_type=jnp.float32) + b2

            # Reverse-ODE Euler update in f32: x <- x + dt * sigma^2 * score.
            x = x + coeff * score

        o_ref[...] = x

    return kernel


def _make_ctm_kernel_dyn(n_steps, cdtype):
    """Same sampler, schedule read from SMEM (for large N; partial unroll)."""

    def kernel(sched_ref, x_ref, w1t_ref, b1_ref, wt_ref, w2t_ref, b2_ref, o_ref):
        w1t = w1t_ref[...].astype(cdtype)
        w2t = w2t_ref[...].astype(cdtype)
        b1 = b1_ref[...]
        wt = wt_ref[...]
        b2 = b2_ref[...]

        def step(i, x):
            sigma = sched_ref[i, 0]
            coeff = sched_ref[i, 1]
            bias = (b1 + sigma * wt).astype(cdtype)
            h = jnp.dot(w1t, x.astype(cdtype),
                        preferred_element_type=jnp.float32)
            h = h.astype(cdtype) + bias
            h = jax.nn.gelu(h, approximate=True)
            score = jnp.dot(w2t, h, preferred_element_type=jnp.float32) + b2
            return x + coeff * score

        x0 = x_ref[...].astype(jnp.float32)
        o_ref[...] = jax.lax.fori_loop(0, n_steps, step, x0, unroll=2)

    return kernel


# ------------------------------ Wrapper ---------------------------------------
def _hidden_compute_dtype():
    """bf16 hidden path on v6e / v7x (bf16 VALU/EUP); f32 on v5e / unknown."""
    try:
        kind = jax.devices()[0].device_kind.lower()
    except Exception:
        return jnp.float32
    if any(tag in kind for tag in ("v6", "v7", "trillium")):
        return jnp.bfloat16
    return jnp.float32


class SgmseWrapperPallas:
    """JAX/Pallas equivalent of SgmseWrapper.forward (CTM reverse-diffusion)."""

    # Schedules up to this N are baked into the kernel and fully unrolled.
    _BAKE_N = 16

    def __init__(self, channels=4, hidden=32, N=4,
                 sigma_min=0.05, sigma_max=0.5, seed=0):
        self.N = N
        self.channels = channels
        self.hidden = hidden
        self.cdtype = _hidden_compute_dtype()

        k = jax.random.PRNGKey(seed)
        k1, k2, k3, k4, k5 = jax.random.split(k, 5)
        scale1 = 1.0 / float(np.sqrt(channels))
        scale2 = 1.0 / float(np.sqrt(hidden))
        # Weights stored pre-transposed for the lane-dense (C, M) kernel layout;
        # matmul weights pre-cast to the hidden compute dtype.
        self.w1t = (jax.random.normal(k1, (channels, hidden), jnp.float32)
                    * scale1).T.astype(self.cdtype)                              # (HID, C)
        self.b1 = (jax.random.normal(k2, (1, hidden), jnp.float32) * 0.01).T     # (HID, 1)
        self.wt = (jax.random.normal(k3, (1, hidden), jnp.float32) * 0.1).T      # (HID, 1)
        self.w2t = (jax.random.normal(k4, (hidden, channels), jnp.float32)
                    * scale2).T.astype(self.cdtype)                              # (C, HID)
        self.b2 = (jax.random.normal(k5, (1, channels), jnp.float32) * 0.01).T   # (C, 1)

        # Geometric sigma schedule, computed once on host.
        sig = sigma_max * (sigma_min / sigma_max) ** (
            np.arange(N + 1, dtype=np.float64) / N)
        sigma = sig[:-1]
        dt = sig[:-1] - sig[1:]
        coeff = dt * sigma * sigma                       # dt * sigma^2, pre-folded
        self.schedule = [(float(s), float(c)) for s, c in zip(sigma, coeff)]
        self.sched_arr = jnp.asarray(
            np.stack([sigma, coeff], axis=1), dtype=jnp.float32)

    @staticmethod
    def _pick_tile(m_pad):
        """Largest lane tile <= 512 dividing m_pad with >= 2 grid blocks.

        m_pad is a multiple of 256, so a valid choice always exists. The 512
        cap keeps the (HID, tm) hidden intermediate at <= 16 vregs (f32),
        avoiding register spills; >= 2 blocks keeps both v7x TensorCores busy.
        """
        for tm in (512, 256, 128):
            if m_pad % tm == 0 and m_pad // tm >= 2:
                return tm
        return 128

    def forward(self, x_nchw):
        B, C, H, W = x_nchw.shape
        M = B * H * W
        HID = self.hidden

        # Lane-dense layout: channels on sublanes, flattened spatial on lanes.
        x = jnp.transpose(x_nchw, (1, 0, 2, 3)).reshape(C, M).astype(jnp.float32)

        # Pad lanes to a multiple of 256: >= 2 parallel blocks, unmasked stores.
        pad = (-M) % 256
        m_pad = M + pad
        if pad:
            x = jnp.pad(x, ((0, 0), (0, pad)))

        tm = self._pick_tile(m_pad)
        grid = (m_pad // tm,)

        vmem_specs = [
            pl.BlockSpec((C, tm), lambda i: (0, i)),       # x tile
            pl.BlockSpec((HID, C), lambda i: (0, 0)),      # w1^T
            pl.BlockSpec((HID, 1), lambda i: (0, 0)),      # b1
            pl.BlockSpec((HID, 1), lambda i: (0, 0)),      # w_t
            pl.BlockSpec((C, HID), lambda i: (0, 0)),      # w2^T
            pl.BlockSpec((C, 1), lambda i: (0, 0)),        # b2
        ]
        weights = (self.w1t, self.b1, self.wt, self.w2t, self.b2)

        if self.N <= self._BAKE_N:
            # Small N: schedule baked as immediates, fully unrolled step loop.
            kernel = _make_ctm_kernel_const(self.schedule, self.cdtype)
            in_specs = vmem_specs
            args = (x,) + weights
        else:
            # Large N: schedule in SMEM, partially-unrolled fori_loop.
            kernel = _make_ctm_kernel_dyn(self.N, self.cdtype)
            in_specs = [pl.BlockSpec(memory_space=pltpu.MemorySpace.SMEM)] + vmem_specs
            args = (self.sched_arr, x) + weights

        out = pl.pallas_call(
            kernel,
            out_shape=jax.ShapeDtypeStruct((C, m_pad), jnp.float32),
            grid_spec=pltpu.PrefetchScalarGridSpec(
                num_scalar_prefetch=0,
                grid=grid,
                in_specs=in_specs,
                out_specs=pl.BlockSpec((C, tm), lambda i: (0, i)),
            ),
            compiler_params=pltpu.CompilerParams(
                dimension_semantics=("parallel",),
            ),
        )(*args)

        # Strip padding and go back to NCHW.
        out = out[:, :M]
        return jnp.transpose(out.reshape(C, B, H, W), (1, 0, 2, 3))

    __call__ = forward


# ------------------------------- Main ------------------------------------------
if __name__ == "__main__":
    key = jax.random.PRNGKey(0)
    B, C, H, W = 2, 4, 16, 16          # small NCHW "noisy spectrogram" input
    x = jax.random.normal(key, (B, C, H, W), dtype=jnp.float32)

    # Small-N path (baked schedule, fully unrolled).
    model = SgmseWrapperPallas(channels=C, hidden=32, N=4, seed=0)
    out = jax.block_until_ready(model(x))
    assert out.shape == (B, C, H, W)
    assert out.dtype == jnp.float32
    assert bool(jnp.all(jnp.isfinite(out)))

    # Large-N path (SMEM schedule, partially-unrolled fori_loop).
    model_long = SgmseWrapperPallas(channels=C, hidden=32, N=24, seed=1)
    out_long = jax.block_until_ready(model_long(x))
    assert out_long.shape == (B, C, H, W)
    assert out_long.dtype == jnp.float32
    assert bool(jnp.all(jnp.isfinite(out_long)))

    print("KERNEL_OK")
</pallas_src>

<mosaic_0001>
module attributes {stable_mosaic.version = 11 : i64} {
  func.func @kernel(%arg0: i32, %arg1: memref<4x256xf32, #tpu.memory_space<vmem>>, %arg2: memref<32x4xf32, #tpu.memory_space<vmem>>, %arg3: memref<32x1xf32, #tpu.memory_space<vmem>>, %arg4: memref<32x1xf32, #tpu.memory_space<vmem>>, %arg5: memref<4x32xf32, #tpu.memory_space<vmem>>, %arg6: memref<4x1xf32, #tpu.memory_space<vmem>>, %arg7: memref<4x256xf32, #tpu.memory_space<vmem>>) attributes {dimension_semantics = [#tpu.dimension_semantics<parallel>], iteration_bounds = array<i64: 2>, scalar_prefetch = 0 : i64, scratch_operands = 0 : i64, tpu.core_type = #tpu.core_type<tc>, window_params = [{transform_indices = @transform_0, window_bounds = array<i64: 4, 256>}, {pipeline_mode = #tpu.pipeline_mode<synchronous>, transform_indices = @transform_1, window_bounds = array<i64: 32, 4>}, {pipeline_mode = #tpu.pipeline_mode<synchronous>, transform_indices = @transform_2, window_bounds = array<i64: 32, 1>}, {pipeline_mode = #tpu.pipeline_mode<synchronous>, transform_indices = @transform_3, window_bounds = array<i64: 32, 1>}, {pipeline_mode = #tpu.pipeline_mode<synchronous>, transform_indices = @transform_4, window_bounds = array<i64: 4, 32>}, {pipeline_mode = #tpu.pipeline_mode<synchronous>, transform_indices = @transform_5, window_bounds = array<i64: 4, 1>}, {transform_indices = @transform_6, window_bounds = array<i64: 4, 256>}]} {
    %c0 = arith.constant 0 : index
    %c0_0 = arith.constant 0 : index
    %0 = vector.load %arg2[%c0, %c0_0] : memref<32x4xf32, #tpu.memory_space<vmem>>, vector<32x4xf32>
    %c0_1 = arith.constant 0 : index
    %c0_2 = arith.constant 0 : index
    %1 = vector.load %arg5[%c0_1, %c0_2] : memref<4x32xf32, #tpu.memory_space<vmem>>, vector<4x32xf32>
    %c0_3 = arith.constant 0 : index
    %c0_4 = arith.constant 0 : index
    %2 = vector.load %arg3[%c0_3, %c0_4] : memref<32x1xf32, #tpu.memory_space<vmem>>, vector<32x1xf32>
    %c0_5 = arith.constant 0 : index
    %c0_6 = arith.constant 0 : index
    %3 = vector.load %arg4[%c0_5, %c0_6] : memref<32x1xf32, #tpu.memory_space<vmem>>, vector<32x1xf32>
    %c0_7 = arith.constant 0 : index
    %c0_8 = arith.constant 0 : index
    %4 = vector.load %arg6[%c0_7, %c0_8] : memref<4x1xf32, #tpu.memory_space<vmem>>, vector<4x1xf32>
    %c0_9 = arith.constant 0 : index
    %c0_10 = arith.constant 0 : index
    %5 = vector.load %arg1[%c0_9, %c0_10] : memref<4x256xf32, #tpu.memory_space<vmem>>, vector<4x256xf32>
    %cst = arith.constant 5.000000e-01 : f32
    %6 = vector.broadcast %cst : f32 to vector<32x1xf32>
    %7 = arith.mulf %6, %3 : vector<32x1xf32>
    %8 = arith.addf %2, %7 : vector<32x1xf32>
    %cst_11 = arith.constant dense<0.000000e+00> : vector<32x256xf32>
    %9 = tpu.matmul %0, %5, %cst_11 {dimension_numbers = #tpu.dot_dimension_numbers<[1], [0], [0], [1], [0, 0, 1, 1], [], []>} : vector<32x4xf32>, vector<4x256xf32>, vector<32x256xf32> -> vector<32x256xf32>
    %10 = vector.broadcast %8 : vector<32x1xf32> to vector<32x256xf32>
    %11 = arith.addf %9, %10 : vector<32x256xf32>
    %12 = arith.mulf %11, %11 : vector<32x256xf32>
    %13 = arith.mulf %11, %12 : vector<32x256xf32>
    %cst_12 = arith.constant 4.471500e-02 : f32
    %14 = vector.broadcast %cst_12 : f32 to vector<32x256xf32>
    %15 = arith.mulf %14, %13 : vector<32x256xf32>
    %16 = arith.addf %11, %15 : vector<32x256xf32>
    %cst_13 = arith.constant 0.797884583 : f32
    %17 = vector.broadcast %cst_13 : f32 to vector<32x256xf32>
    %18 = arith.mulf %17, %16 : vector<32x256xf32>
    %19 = math.tanh %18 : vector<32x256xf32>
    %cst_14 = arith.constant 1.000000e+00 : f32
    %20 = vector.broadcast %cst_14 : f32 to vector<32x256xf32>
    %21 = arith.addf %20, %19 : vector<32x256xf32>
    %cst_15 = arith.constant 5.000000e-01 : f32
    %22 = vector.broadcast %cst_15 : f32 to vector<32x256xf32>
    %23 = arith.mulf %22, %21 : vector<32x256xf32>
    %24 = arith.mulf %11, %23 : vector<32x256xf32>
    %cst_16 = arith.constant dense<0.000000e+00> : vector<4x256xf32>
    %25 = tpu.matmul %1, %24, %cst_16 {dimension_numbers = #tpu.dot_dimension_numbers<[1], [0], [0], [1], [0, 0, 1, 1], [], []>} : vector<4x32xf32>, vector<32x256xf32>, vector<4x256xf32> -> vector<4x256xf32>
    %26 = vector.broadcast %4 : vector<4x1xf32> to vector<4x256xf32>
    %27 = arith.addf %25, %26 : vector<4x256xf32>
    %cst_17 = arith.constant 0.0547073334 : f32
    %28 = vector.broadcast %cst_17 : f32 to vector<4x256xf32>
    %29 = arith.mulf %28, %27 : vector<4x256xf32>
    %30 = arith.addf %5, %29 : vector<4x256xf32>
    %cst_18 = arith.constant 0.281170666 : f32
    %31 = vector.broadcast %cst_18 : f32 to vector<32x1xf32>
    %32 = arith.mulf %31, %3 : vector<32x1xf32>
    %33 = arith.addf %2, %32 : vector<32x1xf32>
    %cst_19 = arith.constant dense<0.000000e+00> : vector<32x256xf32>
    %34 = tpu.matmul %0, %30, %cst_19 {dimension_numbers = #tpu.dot_dimension_numbers<[1], [0], [0], [1], [0, 0, 1, 1], [], []>} : vector<32x4xf32>, vector<4x256xf32>, vector<32x256xf32> -> vector<32x256xf32>
    %35 = vector.broadcast %33 : vector<32x1xf32> to vector<32x256xf32>
    %36 = arith.addf %34, %35 : vector<32x256xf32>
    %37 = arith.mulf %36, %36 : vector<32x256xf32>
    %38 = arith.mulf %36, %37 : vector<32x256xf32>
    %cst_20 = arith.constant 4.471500e-02 : f32
    %39 = vector.broadcast %cst_20 : f32 to vector<32x256xf32>
    %40 = arith.mulf %39, %38 : vector<32x256xf32>
    %41 = arith.addf %36, %40 : vector<32x256xf32>
    %cst_21 = arith.constant 0.797884583 : f32
    %42 = vector.broadcast %cst_21 : f32 to vector<32x256xf32>
    %43 = arith.mulf %42, %41 : vector<32x256xf32>
    %44 = math.tanh %43 : vector<32x256xf32>
    %cst_22 = arith.constant 1.000000e+00 : f32
    %45 = vector.broadcast %cst_22 : f32 to vector<32x256xf32>
    %46 = arith.addf %45, %44 : vector<32x256xf32>
    %cst_23 = arith.constant 5.000000e-01 : f32
    %47 = vector.broadcast %cst_23 : f32 to vector<32x256xf32>
    %48 = arith.mulf %47, %46 : vector<32x256xf32>
    %49 = arith.mulf %36, %48 : vector<32x256xf32>
    %cst_24 = arith.constant dense<0.000000e+00> : vector<4x256xf32>
    %50 = tpu.matmul %1, %49, %cst_24 {dimension_numbers = #tpu.dot_dimension_numbers<[1], [0], [0], [1], [0, 0, 1, 1], [], []>} : vector<4x32xf32>, vector<32x256xf32>, vector<4x256xf32> -> vector<4x256xf32>
    %51 = vector.broadcast %4 : vector<4x1xf32> to vector<4x256xf32>
    %52 = arith.addf %50, %51 : vector<4x256xf32>
    %cst_25 = arith.constant 0.00972849224 : f32
    %53 = vector.broadcast %cst_25 : f32 to vector<4x256xf32>
    %54 = arith.mulf %53, %52 : vector<4x256xf32>
    %55 = arith.addf %30, %54 : vector<4x256xf32>
    %cst_26 = arith.constant 0.158113882 : f32
    %56 = vector.broadcast %cst_26 : f32 to vector<32x1xf32>
    %57 = arith.mulf %56, %3 : vector<32x1xf32>
    %58 = arith.addf %2, %57 : vector<32x1xf32>
    %cst_27 = arith.constant dense<0.000000e+00> : vector<32x256xf32>
    %59 = tpu.matmul %0, %55, %cst_27 {dimension_numbers = #tpu.dot_dimension_numbers<[1], [0], [0], [1], [0, 0, 1, 1], [], []>} : vector<32x4xf32>, vector<4x256xf32>, vector<32x256xf32> -> vector<32x256xf32>
    %60 = vector.broadcast %58 : vector<32x1xf32> to vector<32x256xf32>
    %61 = arith.addf %59, %60 : vector<32x256xf32>
    %62 = arith.mulf %61, %61 : vector<32x256xf32>
    %63 = arith.mulf %61, %62 : vector<32x256xf32>
    %cst_28 = arith.constant 4.471500e-02 : f32
    %64 = vector.broadcast %cst_28 : f32 to vector<32x256xf32>
    %65 = arith.mulf %64, %63 : vector<32x256xf32>
    %66 = arith.addf %61, %65 : vector<32x256xf32>
    %cst_29 = arith.constant 0.797884583 : f32
    %67 = vector.broadcast %cst_29 : f32 to vector<32x256xf32>
    %68 = arith.mulf %67, %66 : vector<32x256xf32>
    %69 = math.tanh %68 : vector<32x256xf32>
    %cst_30 = arith.constant 1.000000e+00 : f32
    %70 = vector.broadcast %cst_30 : f32 to vector<32x256xf32>
    %71 = arith.addf %70, %69 : vector<32x256xf32>
    %cst_31 = arith.constant 5.000000e-01 : f32
    %72 = vector.broadcast %cst_31 : f32 to vector<32x256xf32>
    %73 = arith.mulf %72, %71 : vector<32x256xf32>
    %74 = arith.mulf %61, %73 : vector<32x256xf32>
    %cst_32 = arith.constant dense<0.000000e+00> : vector<4x256xf32>
    %75 = tpu.matmul %1, %74, %cst_32 {dimension_numbers = #tpu.dot_dimension_numbers<[1], [0], [0], [1], [0, 0, 1, 1], [], []>} : vector<4x32xf32>, vector<32x256xf32>, vector<4x256xf32> -> vector<4x256xf32>
    %76 = vector.broadcast %4 : vector<4x1xf32> to vector<4x256xf32>
    %77 = arith.addf %75, %76 : vector<4x256xf32>
    %cst_33 = arith.constant 0.00172999781 : f32
    %78 = vector.broadcast %cst_33 : f32 to vector<4x256xf32>
    %79 = arith.mulf %78, %77 : vector<4x256xf32>
    %80 = arith.addf %55, %79 : vector<4x256xf32>
    %cst_34 = arith.constant 0.0889139696 : f32
    %81 = vector.broadcast %cst_34 : f32 to vector<32x1xf32>
    %82 = arith.mulf %81, %3 : vector<32x1xf32>
    %83 = arith.addf %2, %82 : vector<32x1xf32>
    %cst_35 = arith.constant dense<0.000000e+00> : vector<32x256xf32>
    %84 = tpu.matmul %0, %80, %cst_35 {dimension_numbers = #tpu.dot_dimension_numbers<[1], [0], [0], [1], [0, 0, 1, 1], [], []>} : vector<32x4xf32>, vector<4x256xf32>, vector<32x256xf32> -> vector<32x256xf32>
    %85 = vector.broadcast %83 : vector<32x1xf32> to vector<32x256xf32>
    %86 = arith.addf %84, %85 : vector<32x256xf32>
    %87 = arith.mulf %86, %86 : vector<32x256xf32>
    %88 = arith.mulf %86, %87 : vector<32x256xf32>
    %cst_36 = arith.constant 4.471500e-02 : f32
    %89 = vector.broadcast %cst_36 : f32 to vector<32x256xf32>
    %90 = arith.mulf %89, %88 : vector<32x256xf32>
    %91 = arith.addf %86, %90 : vector<32x256xf32>
    %cst_37 = arith.constant 0.797884583 : f32
    %92 = vector.broadcast %cst_37 : f32 to vector<32x256xf32>
    %93 = arith.mulf %92, %91 : vector<32x256xf32>
    %94 = math.tanh %93 : vector<32x256xf32>
    %cst_38 = arith.constant 1.000000e+00 : f32
    %95 = vector.broadcast %cst_38 : f32 to vector<32x256xf32>
    %96 = arith.addf %95, %94 : vector<32x256xf32>
    %cst_39 = arith.constant 5.000000e-01 : f32
    %97 = vector.broadcast %cst_39 : f32 to vector<32x256xf32>
    %98 = arith.mulf %97, %96 : vector<32x256xf32>
    %99 = arith.mulf %86, %98 : vector<32x256xf32>
    %cst_40 = arith.constant dense<0.000000e+00> : vector<4x256xf32>
    %100 = tpu.matmul %1, %99, %cst_40 {dimension_numbers = #tpu.dot_dimension_numbers<[1], [0], [0], [1], [0, 0, 1, 1], [], []>} : vector<4x32xf32>, vector<32x256xf32>, vector<4x256xf32> -> vector<4x256xf32>
    %101 = vector.broadcast %4 : vector<4x1xf32> to vector<4x256xf32>
    %102 = arith.addf %100, %101 : vector<4x256xf32>
    %cst_41 = arith.constant 3.07641953E-4 : f32
    %103 = vector.broadcast %cst_41 : f32 to vector<4x256xf32>
    %104 = arith.mulf %103, %102 : vector<4x256xf32>
    %105 = arith.addf %80, %104 : vector<4x256xf32>
    %c0_42 = arith.constant 0 : index
    %c0_43 = arith.constant 0 : index
    %106 = vector.load %arg7[%c0_42, %c0_43] : memref<4x256xf32, #tpu.memory_space<vmem>>, vector<4x256xf32>
    tpu.vector_store %arg7[%c0_42, %c0_43], %105 {strides = array<i32>} : memref<4x256xf32, #tpu.memory_space<vmem>>, vector<4x256xf32>,
    return
  }
  func.func @transform_0(%arg0: i32) -> (i32, i32) {
    %c0_i32 = arith.constant 0 : i32
    %c0_i32_0 = arith.constant 0 : i32
    return %c0_i32, %arg0 : i32, i32
  }
  func.func @transform_1(%arg0: i32) -> (i32, i32) {
    %c0_i32 = arith.constant 0 : i32
    %c0_i32_0 = arith.constant 0 : i32
    %c0_i32_1 = arith.constant 0 : i32
    return %c0_i32, %c0_i32_0 : i32, i32
  }
  func.func @transform_2(%arg0: i32) -> (i32, i32) {
    %c0_i32 = arith.constant 0 : i32
    %c0_i32_0 = arith.constant 0 : i32
    %c0_i32_1 = arith.constant 0 : i32
    return %c0_i32, %c0_i32_0 : i32, i32
  }
  func.func @transform_3(%arg0: i32) -> (i32, i32) {
    %c0_i32 = arith.constant 0 : i32
    %c0_i32_0 = arith.constant 0 : i32
    %c0_i32_1 = arith.constant 0 : i32
    return %c0_i32, %c0_i32_0 : i32, i32
  }
  func.func @transform_4(%arg0: i32) -> (i32, i32) {
    %c0_i32 = arith.constant 0 : i32
    %c0_i32_0 = arith.constant 0 : i32
    %c0_i32_1 = arith.constant 0 : i32
    return %c0_i32, %c0_i32_0 : i32, i32
  }
  func.func @transform_5(%arg0: i32) -> (i32, i32) {
    %c0_i32 = arith.constant 0 : i32
    %c0_i32_0 = arith.constant 0 : i32
    %c0_i32_1 = arith.constant 0 : i32
    return %c0_i32, %c0_i32_0 : i32, i32
  }
  func.func @transform_6(%arg0: i32) -> (i32, i32) {
    %c0_i32 = arith.constant 0 : i32
    %c0_i32_0 = arith.constant 0 : i32
    return %c0_i32, %arg0 : i32, i32
  }
}

</mosaic_0001>

<bundles_post_ra>
// kernel: tpu_custom_call.1
= control target key start
LH: loop header
LB: loop body
LE: loop exit
PB: predicated region body
PF: predicated region fallthrough
CT: control target
= control target key end

     0   :  { %11 = vsyncpa [#allocation3], 0  ;;  %s1962_s0 = inlined_call_operand.vmem [shape: f32[4,512], index: 0, kind: input, shape index: {}]   ;;  %s1963_s1 = inlined_call_operand.vmem [shape: f32[32,4], index: 1, kind: input, shape index: {}]   ;;  %s1964_s2 = inlined_call_operand.vmem [shape: f32[32,1], index: 2, kind: input, shape index: {}]   ;;  %s1965_s3 = inlined_call_operand.vmem [shape: f32[32,1], index: 3, kind: input, shape index: {}]   ;;  %s1966_s4 = inlined_call_operand.vmem [shape: f32[4,32], index: 4, kind: input, shape index: {}]   ;;  %s1967_s5 = inlined_call_operand.vmem [shape: f32[4,1], index: 5, kind: input, shape index: {}]   ;;  %s1968_s6 = inlined_call_operand.hbm [shape: f32[4,512], index: 6, kind: output, shape index: {}]  }
   0x1   :  { %13 = vsyncpa [#allocation3 + $0x1], 0  ;;  %s1492_s21 = smov 0   ;;  %s1494_s22 = smov 0  }
   0x2   :  { %s1496_s23 = smov 0   ;;  %s1498_s24 = smov 0  }
   0x3 LB: > { %s1513_s25 = sadd.s32 4294967295, %s1454_s24   ;;  %s1224_s26 = sadd.s32 4294967294, %s1454_s24   ;;  %s1454_s24 = sphi %s1498_s24, %s1974_s24   ;;  %s1450_s23 = sphi %s1496_s23, %s1973_s23   ;;  %s1446_s22 = sphi %s1494_s22, %s1972_s22   ;;  %s1442_s21 = sphi %s1492_s21, %s1971_s21  }
   0x4   : > { %s1517_s27 = sadd.s32 1, %s1454_s24   ;;  %s157_s28 = sadd.s32 1, %s1450_s23 }
   0x5   : > { %s154_s29 = ssub.s32 %s1454_s24, %s1517_s27  ;;  %p167_p0 = scmp.ne.s32.totalorder %s1450_s23, %s1446_s22 }
   0x6   : > { %p155_p1 = scmp.eq.s32.totalorder %s154_s29, 0  ;;  %p168_p2 = scmp.eq.s32.totalorder %s1513_s25, 1 }
   0x7   : > { %p173_p3 = scmp.ne.s32.totalorder %s1446_s22, %s1442_s21  ;;  %p174_p4 = scmp.eq.s32.totalorder %s1224_s26, 1 }
   0x8   : > { %s1528_s30 = scalar_select %p155_p1, %s1450_s23, %s157_s28  }
   0x9   : > { %p1530_p5 = por %p168_p2, %p167_p0  ;;  %p1534_p6 = por %p174_p4, %p173_p3 }
   0xa   : > { %p1227_p7 = scmp.ge.s32.totalorder %s1454_s24, 1  ;;  %p216_p8 = scmp.lt.s32.totalorder %s1454_s24, 3 }
   0xc   : > { %p217_p9 = pnand %p1227_p7, %p216_p8 }
   0xd   : > { %s1229_s13 = sshll.u32 (!%p217_p9), %s1513_s25, 1  ;;  %s1284_s15 = sshll.u32 (!%p217_p9), %s1513_s25, 3 }
   0xe   : > { %220 = sbr.rel (%p217_p9) target bundleno = 1358 (0x54e), region = 44  ;;  %p247_p10 = scmp.lt.s32.totalorder (!%p217_p9), %s1229_s13, 3 }
   0xf   : > { %s1160_s17 = scalar_lea.hbm (!%p217_p9), %s1968_s6, %s1284_s15  ;;  %s1412_s10 = scalar_lea.hbm (!%p217_p9), %s1968_s6, 16 }
  0x10   : > { %s1164_s20 = sshll.u32 (!%p217_p9), %s1160_s17, 4  ;;  %s1165_s20 = int_to_ptr.hbm [resolvable:$true] %s1164_s20 }
  0x11   : > { %s1406_s26 = sshra.s32 (!%p217_p9), %s1165_s20, 4  ;;  %s1407_s26 = int_to_ptr.hbm [resolvable:$true] %s1406_s26 }
  0x12   : > { %p1413_p0 = scmp.lt.s32.totalorder (!%p217_p9), %s1407_s26, %s1968_s6 }
  0x13   : > { %v1543_v0 = vld [vmem:[%s1964_s2 + $0x18] sm:$0xff]  ;;  %v1456_v2 = vmov 0   ;;  %v1555_v4 = vld [vmem:[%s1964_s2 + $0x8] sm:$0xff]  ;;  %v1566_v7 = vld [vmem:[%s1965_s3 + $0x10] sm:$0xff]  ;;  %s1976_s13 = smov (!%p247_p10, %s1229_s13), 3  ;;  %vm313_vm0 = vcmask 1043456  }
  0x14   : > { %v1548_v1 = vld [vmem:[%s1965_s3 + $0x18] sm:$0xff]  ;;  %1325 = vset.pattern.permute.xlu0 %v1456_v2  ;;  %1326 = vset.pattern.permute.xlu1 %v1456_v2  ;;  %v1560_v5 = vld [vmem:[%s1965_s3 + $0x8] sm:$0xff]  ;;  %v1572_v9 = vld [vmem:[%s1965_s3] sm:$0xff]  ;;  %v270_v11 = vmul.f32 0.5, %v1566_v7  ;;  %s1230_s28 = sshll.u32 %s1976_s13, 2  ;;  %vm300_vm1 = vcmask 31744  }
  0x15   : > { %v271_v3 = vmul.f32 0.5, %v1548_v1  ;;  %v269_v6 = vmul.f32 0.5, %v1560_v5  ;;  %1327 = vset.pattern.permute.xlu2 %v1456_v2  ;;  %v1579_v12 = vld [vmem:[%s1964_s2 + $0x10] sm:$0xff]  ;;  %s250_s12 = scalar_lea.vmem %s1962_s0, %s1230_s28  ;;  %v268_v13 = vmul.f32 0.5, %v1572_v9  ;;  %v1590_v15 = vld [vmem:[%s1964_s2] sm:$0xff]  ;;  %v1614_v26 = vld [vmem:[%s1963_s1 + $0x8] sm:$0xff] }
  0x16   : > { %v1585_v14 = vld [vmem:[%s250_s12] sm:$0xff]  ;;  %v274_v16 = vadd.f32 %v270_v11, %v1579_v12  ;;  %v507_v18 = vmul.f32 0.28117067, %v1566_v7  ;;  %v506_v20 = vmul.f32 0.28117067, %v1560_v5  ;;  %v1627_v31 = vld [vmem:[%s1963_s1 + $0x10] sm:$0xff] }
  0x17   : > { %v275_v8 = vadd.f32 %v271_v3, %v1543_v0  ;;  %v273_v10 = vadd.f32 %v269_v6, %v1555_v4  ;;  %297 = vst [vmem:[#allocation1] ss:$2 sm:$0xff] %v1585_v14  ;;  %v272_v17 = vadd.f32 %v268_v13, %v1590_v15  ;;  %v1599_v19 = vld [vmem:[%s1963_s1] sm:$0xff]  ;;  %v722_v25 = vmul.f32 0.15811388, %v1548_v1  ;;  %v1640_v36 = vld [vmem:[%s1963_s1 + $0x18] sm:$0xff] }
  0x18   : > { %v511_v23 = vadd.f32 %v507_v18, %v1579_v12  ;;  %v510_v24 = vadd.f32 %v506_v20, %v1555_v4  ;;  %v721_v27 = vmul.f32 0.15811388, %v1566_v7  ;;  %v719_v30 = vmul.f32 0.15811388, %v1572_v9  ;;  %s243_s12 = sand.u32 1, %s1446_s22   ;;  %s1408_s28 = scalar_lea.hbm %s1407_s26, 8 }
  0x19   : > { %293 = vperm.xlu0 %1325, %v275_v8   ;;  %283 = vperm.xlu1 %1326, %v273_v10   ;;  %v726_v28 = vadd.f32 %v722_v25, %v1543_v0  ;;  %v936_v32 = vmul.f32 0.08891397, %v1548_v1  ;;  %v934_v35 = vmul.f32 0.08891397, %v1560_v5  ;;  %v933_v37 = vmul.f32 0.08891397, %v1572_v9  ;;  %p1409_p11 = scmp.ne.s32.totalorder %s1407_s26, %s1408_s28  ;;  %p1414_p1 = scmp.lt.s32.totalorder %s1412_s10, %s1408_s28 }
  0x1a   : > { %v725_v29 = vadd.f32 %v721_v27, %v1579_v12  ;;  %v723_v33 = vadd.f32 %v719_v30, %v1590_v15  ;;  %v266_v30 = vld [vmem:[%s1967_s5] sm:$0xf]  ;;  %vm453_vm2 = vcmask 261120   ;;  %s1228_s14 = sshll.u32 %s243_s12, 3  ;;  %s1149_s25 = scalar_lea.sflag [#allocation3], %s243_s12 }
  0x1b   : > { %v940_v34 = vadd.f32 %v936_v32, %v1543_v0  ;;  %v938_v38 = vadd.f32 %v934_v35, %v1555_v4  ;;  %v937_v39 = vadd.f32 %v933_v37, %v1590_v15  ;;  %450 = vperm.xlu2 %1327, %v266_v30   ;;  %v508_v35 = vmul.f32 0.28117067, %v1548_v1  ;;  %s245_s18 = scalar_lea.vmem [#allocation2], %s1228_s14  ;;  %p1410_p12 = pnand %p1409_p11, %p1530_p5 }
  0x1c   : > { %s1162_s19 = sshll.u32 %s245_s18, 4  ;;  %p1415_p2 = por %p1414_p1, %p1413_p0  ;;  %s1163_s19 = int_to_ptr.vmem [resolvable:$true] %s1162_s19 }
  0x1d   : > { %p1411_p13 = pneg %p1410_p12 }
  0x1e   : > { %v298_v21 = vld.sshfl [vmem:[#allocation1] sm:$0xff pattern:$0x75316420]  ;;  %v299_v22 = vld.sshfl [vmem:[#allocation1 + $0x8] sm:$0xff pattern:$0x75316420] }
  0x1f   : > { %1231 = vmatpush.msk.msra.mxu0 %vm313_vm0, %v298_v21  ;;  %1236 = vmatpush.msk.msra.mxu1 %vm313_vm0, %v299_v22  ;;  %p1416_p3 = pnand %p1415_p2, %p1411_p13 }
  0x20   : > { %1232 = vmatmul.msk.f32.vlgmr.msra.gmra.mxu0 %vm300_vm1, %v1599_v19  ;;  %1237 = vmatmul.msk.f32.vlgmr.msra.gmra.mxu1 %vm300_vm1, %v1599_v19 }
  0x21   : > { %288 = vperm.xlu0 %1325, %v274_v16   ;;  %278 = vperm.xlu1 %1326, %v272_v17  }
  0x28   : > { %1233 = vmatmul.msk.f32.gmra.mxu0 %vm300_vm1, %v1614_v26  ;;  %1238 = vmatmul.msk.f32.gmra.mxu1 %vm300_vm1, %v1614_v26 }
  0x29   : > { %525 = vperm.xlu0 %1325, %v511_v23   ;;  %520 = vperm.xlu1 %1326, %v510_v24  }
  0x30   : > { %1234 = vmatmul.msk.f32.gmra.mxu0 %vm300_vm1, %v1627_v31  ;;  %1239 = vmatmul.msk.f32.gmra.mxu1 %vm300_vm1, %v1627_v31 }
  0x31   : > { %744 = vperm.xlu0 %1325, %v726_v28   ;;  %739 = vperm.xlu1 %1326, %v725_v29  }
  0x38   : > { %1235 = vmatmul.msk.f32.gmra.mxu0 %vm300_vm1, %v1640_v36  ;;  %1240 = vmatmul.msk.f32.gmra.mxu1 %vm300_vm1, %v1640_v36 }
  0x39   : > { %729 = vperm.xlu0 %1325, %v723_v33   ;;  %958 = vperm.xlu1 %1326, %v940_v34  }
  0x41   : > { %948 = vperm.xlu0 %1325, %v938_v38   ;;  %943 = vperm.xlu1 %1326, %v937_v39  }
  0x8b   : > { %v284_v40 = vpop.permute.xlu1 %283  ;;  %v294_v43 = vpop.permute.xlu0 %293 }
  0x93   : > { %v279_v44 = vpop.permute.xlu1 %278  ;;  %v289_v54 = vpop.permute.xlu0 %288 }
  0x9d   : > { %v335_v41 = vpop.f32.mrf.mxu0  ;;  %v364_v42 = vpop.f32.mrf.mxu1 }
  0x9e   : > { %v1649_v45 = vadd.f32 %v335_v41, %v279_v44  ;;  %v1651_v46 = vadd.f32 %v364_v42, %v279_v44 }
  0xa0   : > { %v376_v49 = vmul.f32 %v1649_v45, %v1649_v45  ;;  %v377_v51 = vmul.f32 %v1651_v46, %v1651_v46 }
  0xa2   : > { %v384_v53 = vmul.f32 %v376_v49, %v1649_v45  ;;  %v385_v56 = vmul.f32 %v377_v51, %v1651_v46 }
  0xa4   : > { %v392_v62 = vmul.f32 0.044715, %v384_v53  ;;  %v393_v8 = vmul.f32 0.044715, %v385_v56 }
  0xa5   : > { %v338_v47 = vpop.f32.mrf.mxu0  ;;  %v367_v48 = vpop.f32.mrf.mxu1 }
  0xa6   : > { %v1655_v50 = vadd.f32 %v338_v47, %v284_v40  ;;  %v1659_v52 = vadd.f32 %v367_v48, %v284_v40  ;;  %v400_v13 = vadd.f32 %v392_v62, %v1649_v45  ;;  %v401_v23 = vadd.f32 %v393_v8, %v1651_v46 }
  0xa7   : > { %v512_v48 = vadd.f32 %v508_v35, %v1543_v0  ;;  %v720_v8 = vmul.f32 0.15811388, %v1560_v5  ;;  %v935_v35 = vmul.f32 0.08891397, %v1566_v7 }
  0xa8   : > { %v378_v55 = vmul.f32 %v1655_v50, %v1655_v50  ;;  %v379_v57 = vmul.f32 %v1659_v52, %v1659_v52  ;;  %v408_v29 = vmul.f32 0.7978846, %v400_v13  ;;  %v409_v38 = vmul.f32 0.7978846, %v401_v23 }
  0xa9   : > { %530 = vperm.xlu2 %1327, %v512_v48   ;;  %v724_v23 = vadd.f32 %v720_v8, %v1555_v4  ;;  %v939_v7 = vadd.f32 %v935_v35, %v1579_v12 }
  0xaa   : > { %v386_v63 = vmul.f32 %v378_v55, %v1655_v50  ;;  %v387_v6 = vmul.f32 %v379_v57, %v1659_v52  ;;  %1328 = vtanh.f32 %v408_v29  ;;  %v505_v55 = vmul.f32 0.28117067, %v1572_v9 }
  0xab   : > { %1330 = vtanh.f32 %v409_v38 }
  0xac   : > { %v394_v18 = vmul.f32 0.044715, %v386_v63  ;;  %v395_v22 = vmul.f32 0.044715, %v387_v6  ;;  %v509_v0 = vadd.f32 %v505_v55, %v1590_v15 }
  0xad   : > { %v341_v58 = vpop.f32.mrf.mxu0  ;;  %v370_v59 = vpop.f32.mrf.mxu1 }
  0xae   : > { %v1667_v60 = vadd.f32 %v341_v58, %v289_v54  ;;  %v1669_v61 = vadd.f32 %v370_v59, %v289_v54  ;;  %v402_v34 = vadd.f32 %v394_v18, %v1655_v50  ;;  %v403_v37 = vadd.f32 %v395_v22, %v1659_v52 }
  0xb0   : > { %v380_v2 = vmul.f32 %v1667_v60, %v1667_v60  ;;  %v381_v3 = vmul.f32 %v1669_v61, %v1669_v61  ;;  %v410_v47 = vmul.f32 0.7978846, %v402_v34  ;;  %v411_v49 = vmul.f32 0.7978846, %v403_v37  ;;  %v1329_v56 = vpop.eup %1328 }
  0xb1   : > { %v1331_v57 = vpop.eup %1330  ;;  %515 = vperm.xlu2 %1327, %v509_v0   ;;  %v526_v0 = vpop.permute.xlu0 %525 }
  0xb2   : > { %v388_v10 = vmul.f32 %v380_v2, %v1667_v60  ;;  %v389_v11 = vmul.f32 %v381_v3, %v1669_v61  ;;  %v425_v15 = vadd.f32 1.0, %v1331_v57 }
  0xb4   : > { %v396_v16 = vmul.f32 0.044715, %v388_v10  ;;  %v397_v17 = vmul.f32 0.044715, %v389_v11  ;;  %v433_v34 = vmul.f32 0.5, %v425_v15 }
  0xb5   : > { %v344_v20 = vpop.f32.mrf.mxu0  ;;  %v373_v21 = vpop.f32.mrf.mxu1 }
  0xb6   : > { %v345_v24 = vadd.f32 %v344_v20, %v294_v43  ;;  %v374_v25 = vadd.f32 %v373_v21, %v294_v43  ;;  %v404_v27 = vadd.f32 %v396_v16, %v1667_v60  ;;  %v405_v28 = vadd.f32 %v397_v17, %v1669_v61 }
  0xb7   : > { %v424_v20 = vadd.f32 1.0, %v1329_v56 }
  0xb8   : > { %v382_v32 = vmul.f32 %v345_v24, %v345_v24  ;;  %v383_v33 = vmul.f32 %v374_v25, %v374_v25  ;;  %v412_v41 = vmul.f32 0.7978846, %v404_v27  ;;  %v413_v42 = vmul.f32 0.7978846, %v405_v28 }
  0xb9   : > { %734 = vperm.xlu2 %1327, %v724_v23  }
  0xba   : > { %v390_v39 = vmul.f32 %v382_v32, %v345_v24  ;;  %v391_v40 = vmul.f32 %v383_v33, %v374_v25  ;;  %1332 = vtanh.f32 %v412_v41  ;;  %v432_v32 = vmul.f32 0.5, %v424_v20 }
  0xbb   : > { %1334 = vtanh.f32 %v413_v42 }
  0xbc   : > { %v398_v43 = vmul.f32 0.044715, %v390_v39  ;;  %v399_v44 = vmul.f32 0.044715, %v391_v40  ;;  %1336 = vtanh.f32 %v410_v47 }
  0xbd   : > { %1338 = vtanh.f32 %v411_v49 }
  0xbe   : > { %v406_v51 = vadd.f32 %v398_v43, %v345_v24  ;;  %v407_v53 = vadd.f32 %v399_v44, %v374_v25 }
  0xc0   : > { %v414_v1 = vmul.f32 0.7978846, %v406_v51  ;;  %v415_v54 = vmul.f32 0.7978846, %v407_v53  ;;  %v1333_v58 = vpop.eup %1332 }
  0xc1   : > { %v1335_v59 = vpop.eup %1334  ;;  %v428_v2 = vadd.f32 1.0, %v1333_v58  ;;  %953 = vperm.xlu2 %1327, %v939_v7  }
  0xc2   : > { %1340 = vtanh.f32 %v414_v1  ;;  %v1337_v62 = vpop.eup %1336  ;;  %v429_v6 = vadd.f32 1.0, %v1335_v59 }
  0xc3   : > { %1342 = vtanh.f32 %v415_v54  ;;  %v1339_v63 = vpop.eup %1338  ;;  %v426_v9 = vadd.f32 1.0, %v1337_v62  ;;  %v436_v18 = vmul.f32 0.5, %v428_v2  ;;  %v521_v54 = vpop.permute.xlu1 %520 }
  0xc4   : > { %v427_v16 = vadd.f32 1.0, %v1339_v63  ;;  %v437_v22 = vmul.f32 0.5, %v429_v6 }
  0xc5   : > { %v434_v28 = vmul.f32 0.5, %v426_v9  ;;  %v444_v5 = vmul.f32 %v436_v18, %v1667_v60  ;;  %v1703_v60 = vld [vmem:[%s1966_s4] sm:$0xf] }
  0xc6   : > { %v435_v30 = vmul.f32 0.5, %v427_v16  ;;  %v445_v33 = vmul.f32 %v437_v22, %v1669_v61  ;;  %v441_v61 = vmul.f32 %v433_v34, %v1651_v46 }
  0xc7   : > { %v442_v37 = vmul.f32 %v434_v28, %v1655_v50  ;;  %v1711_v50 = vpop.permute.xlu2 %450 }
  0xc8   : > { %v1341_v3 = vpop.eup %1340  ;;  %v443_v4 = vmul.f32 %v435_v30, %v1659_v52 }
  0xc9   : > { %v1343_v10 = vpop.eup %1342  ;;  %v430_v11 = vadd.f32 1.0, %v1341_v3 }
  0xca   : > { %v431_v13 = vadd.f32 1.0, %v1343_v10 }
  0xcb   : > { %v438_v17 = vmul.f32 0.5, %v430_v11 }
  0xcc   : > { %v439_v21 = vmul.f32 0.5, %v431_v13 }
  0xcd   : > { %v446_v27 = vmul.f32 %v438_v17, %v345_v24  ;;  %v440_v24 = vmul.f32 %v432_v32, %v1649_v45 }
  0xce   : > { %v447_v29 = vmul.f32 %v439_v21, %v374_v25 }
  0xcf   : > { %469 = vmatpush.msra.mxu2 %v446_v27 }
  0xd0   : > { %489 = vmatpush.msra.mxu3 %v447_v29 }
  0xd1   : > { %470 = vmatpush.msra.mxu2 %v444_v5 }
  0xd2   : > { %490 = vmatpush.msra.mxu3 %v445_v33 }
  0xd3   : > { %471 = vmatpush.msra.mxu2 %v442_v37 }
  0xd4   : > { %491 = vmatpush.msra.mxu3 %v443_v4 }
  0xd5   : > { %472 = vmatpush.msra.mxu2 %v440_v24 }
  0xd6   : > { %492 = vmatpush.msra.mxu3 %v441_v61  ;;  %1241 = vmatmul.msk.f32.vlgmr.msra.gmra.mxu2 %vm453_vm2, %v1703_v60 }
  0xd7   : > { %1242 = vmatmul.msk.f32.vlgmr.msra.gmra.mxu3 %vm453_vm2, %v1703_v60 }
 0x159   : > { %v474_v45 = vpop.f32.mrf.mxu2 }
 0x15a   : > { %v494_v52 = vpop.f32.mrf.mxu3  ;;  %v475_v25 = vadd.f32 %v474_v45, %v1711_v50 }
 0x15b   : > { %v495_v38 = vadd.f32 %v494_v52, %v1711_v50 }
 0x15c   : > { %v497_v39 = vmul.f32 0.054707333, %v475_v25 }
 0x15d   : > { %v498_v46 = vmul.f32 0.054707333, %v495_v38 }
 0x15f   : > { %v501_v12 = vrot.slane %v498_v46, 4 }
 0x161   : > { %v502_v40 = vsel %vm313_vm0, %v497_v39, %v501_v12 }
 0x162   : > { %v1717_v41 = vadd.f32 %v502_v40, %v1585_v14  ;;  %v531_v14 = vpop.permute.xlu2 %530 }
 0x164   : > { %534 = vst [vmem:[#allocation1] ss:$2 sm:$0xff] %v1717_v41 }
 0x16a   : > { %v516_v48 = vpop.permute.xlu2 %515 }
 0x16b   : > { %v535_v42 = vld.sshfl [vmem:[#allocation1] sm:$0xff pattern:$0x75316420]  ;;  %v536_v43 = vld.sshfl [vmem:[#allocation1 + $0x8] sm:$0xff pattern:$0x75316420] }
 0x16c   : > { %1243 = vmatpush.msk.msrb.mxu2 %vm313_vm0, %v535_v42  ;;  %1248 = vmatpush.msk.msrb.mxu3 %vm313_vm0, %v536_v43 }
 0x16d   : > { %1244 = vmatmul.msk.f32.vlgmr.msrb.gmra.mxu2 %vm300_vm1, %v1599_v19  ;;  %1249 = vmatmul.msk.f32.vlgmr.msrb.gmra.mxu3 %vm300_vm1, %v1599_v19 }
 0x175   : > { %1245 = vmatmul.msk.f32.gmra.mxu2 %vm300_vm1, %v1614_v26  ;;  %1250 = vmatmul.msk.f32.gmra.mxu3 %vm300_vm1, %v1614_v26 }
 0x17d   : > { %1246 = vmatmul.msk.f32.gmra.mxu2 %vm300_vm1, %v1627_v31  ;;  %1251 = vmatmul.msk.f32.gmra.mxu3 %vm300_vm1, %v1627_v31 }
 0x185   : > { %1247 = vmatmul.msk.f32.gmra.mxu2 %vm300_vm1, %v1640_v36  ;;  %1252 = vmatmul.msk.f32.gmra.mxu3 %vm300_vm1, %v1640_v36 }
 0x1f0   : > { %v558_v44 = vpop.f32.mrf.mxu2  ;;  %v587_v47 = vpop.f32.mrf.mxu3 }
 0x1f1   : > { %v1738_v49 = vadd.f32 %v558_v44, %v516_v48  ;;  %v1740_v51 = vadd.f32 %v587_v47, %v516_v48 }
 0x1f3   : > { %v599_v55 = vmul.f32 %v1738_v49, %v1738_v49  ;;  %v600_v57 = vmul.f32 %v1740_v51, %v1740_v51 }
 0x1f5   : > { %v607_v59 = vmul.f32 %v599_v55, %v1738_v49  ;;  %v608_v63 = vmul.f32 %v600_v57, %v1740_v51 }
 0x1f7   : > { %v615_v16 = vmul.f32 0.044715, %v607_v59  ;;  %v616_v18 = vmul.f32 0.044715, %v608_v63 }
 0x1f8   : > { %v561_v53 = vpop.f32.mrf.mxu2  ;;  %v590_v1 = vpop.f32.mrf.mxu3 }
 0x1f9   : > { %v1744_v56 = vadd.f32 %v561_v53, %v521_v54  ;;  %v1748_v58 = vadd.f32 %v590_v1, %v521_v54  ;;  %v623_v27 = vadd.f32 %v615_v16, %v1738_v49  ;;  %v624_v5 = vadd.f32 %v616_v18, %v1740_v51 }
 0x1fb   : > { %v601_v62 = vmul.f32 %v1744_v56, %v1744_v56  ;;  %v602_v2 = vmul.f32 %v1748_v58, %v1748_v58  ;;  %v631_v61 = vmul.f32 0.7978846, %v623_v27  ;;  %v632_v45 = vmul.f32 0.7978846, %v624_v5 }
 0x1fd   : > { %v609_v11 = vmul.f32 %v601_v62, %v1744_v56  ;;  %v610_v17 = vmul.f32 %v602_v2, %v1748_v58  ;;  %1344 = vtanh.f32 %v631_v61 }
 0x1fe   : > { %1346 = vtanh.f32 %v632_v45 }
 0x1ff   : > { %v617_v23 = vmul.f32 0.044715, %v609_v11  ;;  %v618_v30 = vmul.f32 0.044715, %v610_v17 }
 0x200   : > { %v564_v3 = vpop.f32.mrf.mxu2  ;;  %v593_v6 = vpop.f32.mrf.mxu3 }
 0x201   : > { %v1756_v8 = vadd.f32 %v564_v3, %v526_v0  ;;  %v1758_v10 = vadd.f32 %v593_v6, %v526_v0  ;;  %v625_v24 = vadd.f32 %v617_v23, %v1744_v56  ;;  %v626_v7 = vadd.f32 %v618_v30, %v1748_v58 }
 0x203   : > { %v603_v9 = vmul.f32 %v1756_v8, %v1756_v8  ;;  %v604_v13 = vmul.f32 %v1758_v10, %v1758_v10  ;;  %v633_v40 = vmul.f32 0.7978846, %v625_v24  ;;  %v634_v42 = vmul.f32 0.7978846, %v626_v7  ;;  %v1345_v48 = vpop.eup %1344 }
 0x204   : > { %v1347_v53 = vpop.eup %1346  ;;  %v647_v16 = vadd.f32 1.0, %v1345_v48 }
 0x205   : > { %v611_v20 = vmul.f32 %v603_v9, %v1756_v8  ;;  %v612_v21 = vmul.f32 %v604_v13, %v1758_v10 }
 0x207   : > { %v619_v22 = vmul.f32 0.044715, %v611_v20  ;;  %v620_v15 = vmul.f32 0.044715, %v612_v21  ;;  %v648_v20 = vadd.f32 1.0, %v1347_v53 }
 0x208   : > { %v567_v28 = vpop.f32.mrf.mxu2  ;;  %v596_v29 = vpop.f32.mrf.mxu3 }
 0x209   : > { %v568_v32 = vadd.f32 %v567_v28, %v531_v14  ;;  %v597_v33 = vadd.f32 %v596_v29, %v531_v14  ;;  %v627_v34 = vadd.f32 %v619_v22, %v1756_v8  ;;  %v628_v35 = vadd.f32 %v620_v15, %v1758_v10 }
 0x20a   : > { %v655_v28 = vmul.f32 0.5, %v647_v16  ;;  %v656_v30 = vmul.f32 0.5, %v648_v20 }
 0x20b   : > { %v605_v37 = vmul.f32 %v568_v32, %v568_v32  ;;  %v606_v4 = vmul.f32 %v597_v33, %v597_v33  ;;  %v635_v38 = vmul.f32 0.7978846, %v627_v34  ;;  %v636_v46 = vmul.f32 0.7978846, %v628_v35 }
 0x20d   : > { %v613_v52 = vmul.f32 %v605_v37, %v568_v32  ;;  %v614_v25 = vmul.f32 %v606_v4, %v597_v33  ;;  %1348 = vtanh.f32 %v635_v38 }
 0x20e   : > { %1350 = vtanh.f32 %v636_v46 }
 0x20f   : > { %v621_v39 = vmul.f32 0.044715, %v613_v52  ;;  %v622_v12 = vmul.f32 0.044715, %v614_v25  ;;  %1352 = vtanh.f32 %v633_v40 }
 0x210   : > { %1354 = vtanh.f32 %v634_v42 }
 0x211   : > { %v629_v43 = vadd.f32 %v621_v39, %v568_v32  ;;  %v630_v14 = vadd.f32 %v622_v12, %v597_v33  ;;  %v735_v12 = vpop.permute.xlu2 %734 }
 0x213   : > { %v637_v44 = vmul.f32 0.7978846, %v629_v43  ;;  %v638_v47 = vmul.f32 0.7978846, %v630_v14  ;;  %v1349_v1 = vpop.eup %1348 }
 0x214   : > { %v1351_v54 = vpop.eup %1350  ;;  %v651_v0 = vadd.f32 1.0, %v1349_v1 }
 0x215   : > { %1356 = vtanh.f32 %v637_v44  ;;  %v1353_v55 = vpop.eup %1352  ;;  %v652_v62 = vadd.f32 1.0, %v1351_v54  ;;  %v740_v44 = vpop.permute.xlu1 %739 }
 0x216   : > { %1358 = vtanh.f32 %v638_v47  ;;  %v1355_v57 = vpop.eup %1354  ;;  %v649_v3 = vadd.f32 1.0, %v1353_v55  ;;  %v659_v13 = vmul.f32 0.5, %v651_v0 }
 0x217   : > { %v650_v11 = vadd.f32 1.0, %v1355_v57  ;;  %v660_v18 = vmul.f32 0.5, %v652_v62 }
 0x218   : > { %v657_v22 = vmul.f32 0.5, %v649_v3  ;;  %v667_v27 = vmul.f32 %v659_v13, %v1756_v8 }
 0x219   : > { %v658_v23 = vmul.f32 0.5, %v650_v11  ;;  %v668_v29 = vmul.f32 %v660_v18, %v1758_v10 }
 0x21a   : > { %v665_v5 = vmul.f32 %v657_v22, %v1744_v56 }
 0x21b   : > { %v1357_v59 = vpop.eup %1356  ;;  %v666_v34 = vmul.f32 %v658_v23, %v1748_v58 }
 0x21c   : > { %v1359_v63 = vpop.eup %1358  ;;  %v653_v2 = vadd.f32 1.0, %v1357_v59 }
 0x21d   : > { %v654_v6 = vadd.f32 1.0, %v1359_v63 }
 0x21e   : > { %v661_v9 = vmul.f32 0.5, %v653_v2 }
 0x21f   : > { %v662_v17 = vmul.f32 0.5, %v654_v6 }
 0x220   : > { %v669_v21 = vmul.f32 %v661_v9, %v568_v32  ;;  %v663_v32 = vmul.f32 %v655_v28, %v1738_v49 }
 0x221   : > { %v670_v15 = vmul.f32 %v662_v17, %v597_v33  ;;  %v664_v33 = vmul.f32 %v656_v30, %v1740_v51 }
 0x222   : > { %683 = vmatpush.msrb.mxu0 %v669_v21 }
 0x223   : > { %703 = vmatpush.msrb.mxu1 %v670_v15 }
 0x224   : > { %684 = vmatpush.msrb.mxu0 %v667_v27 }
 0x225   : > { %704 = vmatpush.msrb.mxu1 %v668_v29 }
 0x226   : > { %685 = vmatpush.msrb.mxu0 %v665_v5 }
 0x227   : > { %705 = vmatpush.msrb.mxu1 %v666_v34 }
 0x228   : > { %686 = vmatpush.msrb.mxu0 %v663_v32 }
 0x229   : > { %706 = vmatpush.msrb.mxu1 %v664_v33  ;;  %1253 = vmatmul.msk.f32.vlgmr.msrb.gmra.mxu0 %vm453_vm2, %v1703_v60 }
 0x22a   : > { %1254 = vmatmul.msk.f32.vlgmr.msrb.gmra.mxu1 %vm453_vm2, %v1703_v60 }
 0x2a6   : > { %v688_v8 = vpop.f32.mrf.mxu0 }
 0x2a7   : > { %v708_v10 = vpop.f32.mrf.mxu1  ;;  %v689_v56 = vadd.f32 %v688_v8, %v1711_v50 }
 0x2a8   : > { %v709_v58 = vadd.f32 %v708_v10, %v1711_v50 }
 0x2a9   : > { %v711_v37 = vmul.f32 0.009728492, %v689_v56 }
 0x2aa   : > { %v712_v35 = vmul.f32 0.009728492, %v709_v58 }
 0x2ac   : > { %v715_v49 = vrot.slane %v712_v35, 4 }
 0x2ae   : > { %v716_v4 = vsel %vm313_vm0, %v711_v37, %v715_v49 }
 0x2af   : > { %v1788_v51 = vadd.f32 %v716_v4, %v1717_v41  ;;  %v745_v41 = vpop.permute.xlu0 %744 }
 0x2b1   : > { %748 = vst [vmem:[#allocation1] ss:$2 sm:$0xff] %v1788_v51 }
 0x2b7   : > { %v730_v52 = vpop.permute.xlu0 %729 }
 0x2b8   : > { %v749_v24 = vld.sshfl [vmem:[#allocation1] sm:$0xff pattern:$0x75316420]  ;;  %v750_v61 = vld.sshfl [vmem:[#allocation1 + $0x8] sm:$0xff pattern:$0x75316420] }
 0x2b9   : > { %1255 = vmatpush.msk.msra.mxu0 %vm313_vm0, %v749_v24  ;;  %1260 = vmatpush.msk.msra.mxu1 %vm313_vm0, %v750_v61 }
 0x2ba   : > { %1256 = vmatmul.msk.f32.vlgmr.msra.gmra.mxu0 %vm300_vm1, %v1599_v19  ;;  %1261 = vmatmul.msk.f32.vlgmr.msra.gmra.mxu1 %vm300_vm1, %v1599_v19 }
 0x2c2   : > { %1257 = vmatmul.msk.f32.gmra.mxu0 %vm300_vm1, %v1614_v26  ;;  %1262 = vmatmul.msk.f32.gmra.mxu1 %vm300_vm1, %v1614_v26 }
 0x2ca   : > { %1258 = vmatmul.msk.f32.gmra.mxu0 %vm300_vm1, %v1627_v31  ;;  %1263 = vmatmul.msk.f32.gmra.mxu1 %vm300_vm1, %v1627_v31 }
 0x2d2   : > { %1259 = vmatmul.msk.f32.gmra.mxu0 %vm300_vm1, %v1640_v36  ;;  %1264 = vmatmul.msk.f32.gmra.mxu1 %vm300_vm1, %v1640_v36 }
 0x337   : > { %v772_v7 = vpop.f32.mrf.mxu0  ;;  %v801_v45 = vpop.f32.mrf.mxu1 }
 0x338   : > { %v1809_v25 = vadd.f32 %v772_v7, %v730_v52  ;;  %v1811_v38 = vadd.f32 %v801_v45, %v730_v52 }
 0x33a   : > { %v813_v40 = vmul.f32 %v1809_v25, %v1809_v25  ;;  %v814_v43 = vmul.f32 %v1811_v38, %v1811_v38 }
 0x33c   : > { %v821_v47 = vmul.f32 %v813_v40, %v1809_v25  ;;  %v822_v53 = vmul.f32 %v814_v43, %v1811_v38 }
 0x33e   : > { %v829_v59 = vmul.f32 0.044715, %v821_v47  ;;  %v830_v3 = vmul.f32 0.044715, %v822_v53 }
 0x33f   : > { %v775_v46 = vpop.f32.mrf.mxu0  ;;  %v804_v39 = vpop.f32.mrf.mxu1 }
 0x340   : > { %v1815_v42 = vadd.f32 %v775_v46, %v735_v12  ;;  %v1819_v14 = vadd.f32 %v804_v39, %v735_v12  ;;  %v837_v13 = vadd.f32 %v829_v59, %v1809_v25  ;;  %v838_v20 = vadd.f32 %v830_v3, %v1811_v38 }
 0x342   : > { %v815_v48 = vmul.f32 %v1815_v42, %v1815_v42  ;;  %v816_v1 = vmul.f32 %v1819_v14, %v1819_v14  ;;  %v845_v32 = vmul.f32 0.7978846, %v837_v13  ;;  %v846_v8 = vmul.f32 0.7978846, %v838_v20 }
 0x344   : > { %v823_v62 = vmul.f32 %v815_v48, %v1815_v42  ;;  %v824_v6 = vmul.f32 %v816_v1, %v1819_v14  ;;  %1360 = vtanh.f32 %v845_v32 }
 0x345   : > { %1362 = vtanh.f32 %v846_v8 }
 0x346   : > { %v831_v16 = vmul.f32 0.044715, %v823_v62  ;;  %v832_v21 = vmul.f32 0.044715, %v824_v6 }
 0x347   : > { %v778_v54 = vpop.f32.mrf.mxu0  ;;  %v807_v55 = vpop.f32.mrf.mxu1 }
 0x348   : > { %v1827_v57 = vadd.f32 %v778_v54, %v740_v44  ;;  %v1829_v0 = vadd.f32 %v807_v55, %v740_v44  ;;  %v839_v30 = vadd.f32 %v831_v16, %v1815_v42  ;;  %v840_v33 = vadd.f32 %v832_v21, %v1819_v14 }
 0x34a   : > { %v817_v63 = vmul.f32 %v1827_v57, %v1827_v57  ;;  %v818_v2 = vmul.f32 %v1829_v0, %v1829_v0  ;;  %v847_v4 = vmul.f32 0.7978846, %v839_v30  ;;  %v848_v24 = vmul.f32 0.7978846, %v840_v33  ;;  %v1361_v52 = vpop.eup %1360 }
 0x34b   : > { %v1363_v46 = vpop.eup %1362 }
 0x34c   : > { %v825_v11 = vmul.f32 %v817_v63, %v1827_v57  ;;  %v826_v9 = vmul.f32 %v818_v2, %v1829_v0  ;;  %v861_v2 = vadd.f32 1.0, %v1361_v52 }
 0x34e   : > { %v833_v17 = vmul.f32 0.044715, %v825_v11  ;;  %v834_v18 = vmul.f32 0.044715, %v826_v9  ;;  %v862_v11 = vadd.f32 1.0, %v1363_v46  ;;  %v869_v20 = vmul.f32 0.5, %v861_v2 }
 0x34f   : > { %v781_v22 = vpop.f32.mrf.mxu0  ;;  %v810_v15 = vpop.f32.mrf.mxu1 }
 0x350   : > { %v841_v23 = vadd.f32 %v833_v17, %v1827_v57  ;;  %v782_v27 = vadd.f32 %v781_v22, %v745_v41  ;;  %v811_v28 = vadd.f32 %v810_v15, %v745_v41  ;;  %v842_v29 = vadd.f32 %v834_v18, %v1829_v0 }
 0x351   : > { %v870_v22 = vmul.f32 0.5, %v862_v11 }
 0x352   : > { %v819_v5 = vmul.f32 %v782_v27, %v782_v27  ;;  %v820_v34 = vmul.f32 %v811_v28, %v811_v28  ;;  %v849_v58 = vmul.f32 0.7978846, %v841_v23  ;;  %v850_v35 = vmul.f32 0.7978846, %v842_v29 }
 0x354   : > { %v827_v10 = vmul.f32 %v819_v5, %v782_v27  ;;  %v828_v56 = vmul.f32 %v820_v34, %v811_v28  ;;  %1364 = vtanh.f32 %v849_v58 }
 0x355   : > { %1366 = vtanh.f32 %v850_v35  ;;  %v949_v35 = vpop.permute.xlu0 %948 }
 0x356   : > { %v835_v37 = vmul.f32 0.044715, %v827_v10  ;;  %v836_v49 = vmul.f32 0.044715, %v828_v56  ;;  %1368 = vtanh.f32 %v847_v4  ;;  %v954_v4 = vpop.permute.xlu2 %953 }
 0x357   : > { %1370 = vtanh.f32 %v848_v24 }
 0x358   : > { %v843_v61 = vadd.f32 %v835_v37, %v782_v27  ;;  %v844_v41 = vadd.f32 %v836_v49, %v811_v28 }
 0x35a   : > { %v851_v7 = vmul.f32 0.7978846, %v843_v61  ;;  %v852_v45 = vmul.f32 0.7978846, %v844_v41  ;;  %v1365_v39 = vpop.eup %1364 }
 0x35b   : > { %v1367_v12 = vpop.eup %1366  ;;  %v865_v44 = vadd.f32 1.0, %v1365_v39 }
 0x35c   : > { %1372 = vtanh.f32 %v851_v7  ;;  %v1369_v40 = vpop.eup %1368  ;;  %v866_v48 = vadd.f32 1.0, %v1367_v12 }
 0x35d   : > { %1374 = vtanh.f32 %v852_v45  ;;  %v1371_v43 = vpop.eup %1370  ;;  %v863_v54 = vadd.f32 1.0, %v1369_v40  ;;  %v873_v63 = vmul.f32 0.5, %v865_v44 }
 0x35e   : > { %v864_v59 = vadd.f32 1.0, %v1371_v43  ;;  %v874_v6 = vmul.f32 0.5, %v866_v48 }
 0x35f   : > { %v871_v13 = vmul.f32 0.5, %v863_v54  ;;  %v881_v18 = vmul.f32 %v873_v63, %v1827_v57 }
 0x360   : > { %v872_v17 = vmul.f32 0.5, %v864_v59  ;;  %v882_v21 = vmul.f32 %v874_v6, %v1829_v0 }
 0x361   : > { %v879_v15 = vmul.f32 %v871_v13, %v1815_v42 }
 0x362   : > { %v1373_v47 = vpop.eup %1372  ;;  %v880_v23 = vmul.f32 %v872_v17, %v1819_v14 }
 0x363   : > { %v1375_v53 = vpop.eup %1374  ;;  %v867_v1 = vadd.f32 1.0, %v1373_v47 }
 0x364   : > { %v868_v55 = vadd.f32 1.0, %v1375_v53 }
 0x365   : > { %v875_v62 = vmul.f32 0.5, %v867_v1 }
 0x366   : > { %v876_v3 = vmul.f32 0.5, %v868_v55 }
 0x367   : > { %v883_v9 = vmul.f32 %v875_v62, %v782_v27  ;;  %v877_v27 = vmul.f32 %v869_v20, %v1809_v25 }
 0x368   : > { %v884_v16 = vmul.f32 %v876_v3, %v811_v28  ;;  %v878_v28 = vmul.f32 %v870_v22, %v1811_v38 }
 0x369   : > { %897 = vmatpush.msra.mxu2 %v883_v9 }
 0x36a   : > { %917 = vmatpush.msra.mxu3 %v884_v16 }
 0x36b   : > { %898 = vmatpush.msra.mxu2 %v881_v18 }
 0x36c   : > { %918 = vmatpush.msra.mxu3 %v882_v21 }
 0x36d   : > { %899 = vmatpush.msra.mxu2 %v879_v15 }
 0x36e   : > { %919 = vmatpush.msra.mxu3 %v880_v23 }
 0x36f   : > { %900 = vmatpush.msra.mxu2 %v877_v27 }
 0x370   : > { %920 = vmatpush.msra.mxu3 %v878_v28  ;;  %1265 = vmatmul.msk.f32.vlgmr.msra.gmra.mxu2 %vm453_vm2, %v1703_v60 }
 0x371   : > { %1266 = vmatmul.msk.f32.vlgmr.msra.gmra.mxu3 %vm453_vm2, %v1703_v60 }
 0x3f3   : > { %v902_v57 = vpop.f32.mrf.mxu2 }
 0x3f4   : > { %v922_v0 = vpop.f32.mrf.mxu3  ;;  %v903_v42 = vadd.f32 %v902_v57, %v1711_v50 }
 0x3f5   : > { %v923_v14 = vadd.f32 %v922_v0, %v1711_v50 }
 0x3f6   : > { %v925_v30 = vmul.f32 0.0017299978, %v903_v42 }
 0x3f7   : > { %v926_v29 = vmul.f32 0.0017299978, %v923_v14 }
 0x3f9   : > { %v929_v25 = vrot.slane %v926_v29, 4 }
 0x3fb   : > { %v930_v5 = vsel %vm313_vm0, %v925_v30, %v929_v25 }
 0x3fc   : > { %v1859_v38 = vadd.f32 %v930_v5, %v1788_v51  ;;  %v959_v51 = vpop.permute.xlu1 %958 }
 0x3fe   : > { %962 = vst [vmem:[#allocation1] ss:$2 sm:$0xff] %v1859_v38 }
 0x404   : > { %v944_v8 = vpop.permute.xlu1 %943 }
 0x405   : > { %v963_v34 = vld.sshfl [vmem:[#allocation1] sm:$0xff pattern:$0x75316420]  ;;  %v964_v32 = vld.sshfl [vmem:[#allocation1 + $0x8] sm:$0xff pattern:$0x75316420] }
 0x406   : > { %1267 = vmatpush.msk.msrb.mxu2 %vm313_vm0, %v963_v34  ;;  %1272 = vmatpush.msk.msrb.mxu3 %vm313_vm0, %v964_v32 }
 0x407   : > { %1268 = vmatmul.msk.f32.vlgmr.msrb.gmra.mxu2 %vm300_vm1, %v1599_v19  ;;  %1273 = vmatmul.msk.f32.vlgmr.msrb.gmra.mxu3 %vm300_vm1, %v1599_v19 }
 0x40f   : > { %1269 = vmatmul.msk.f32.gmra.mxu2 %vm300_vm1, %v1614_v26  ;;  %1274 = vmatmul.msk.f32.gmra.mxu3 %vm300_vm1, %v1614_v26 }
 0x417   : > { %1270 = vmatmul.msk.f32.gmra.mxu2 %vm300_vm1, %v1627_v31  ;;  %1275 = vmatmul.msk.f32.gmra.mxu3 %vm300_vm1, %v1627_v31 }
 0x41f   : > { %1271 = vmatmul.msk.f32.gmra.mxu2 %vm300_vm1, %v1640_v36  ;;  %1276 = vmatmul.msk.f32.gmra.mxu3 %vm300_vm1, %v1640_v36 }
 0x48a   : > { %v986_v19 = vpop.f32.mrf.mxu2  ;;  %v1015_v33 = vpop.f32.mrf.mxu3 }
 0x48b   : > { %v1880_v10 = vadd.f32 %v986_v19, %v944_v8  ;;  %v1882_v56 = vadd.f32 %v1015_v33, %v944_v8 }
 0x48d   : > { %v1027_v31 = vmul.f32 %v1880_v10, %v1880_v10  ;;  %v1028_v49 = vmul.f32 %v1882_v56, %v1882_v56 }
 0x48f   : > { %v1035_v24 = vmul.f32 %v1027_v31, %v1880_v10  ;;  %v1036_v41 = vmul.f32 %v1028_v49, %v1882_v56 }
 0x491   : > { %v1043_v12 = vmul.f32 0.044715, %v1035_v24  ;;  %v1044_v47 = vmul.f32 0.044715, %v1036_v41 }
 0x492   : > { %v989_v26 = vpop.f32.mrf.mxu2  ;;  %v1018_v58 = vpop.f32.mrf.mxu3 }
 0x493   : > { %v1886_v37 = vadd.f32 %v989_v26, %v949_v35  ;;  %v1890_v36 = vadd.f32 %v1018_v58, %v949_v35  ;;  %v1051_v54 = vadd.f32 %v1043_v12, %v1880_v10  ;;  %v1052_v63 = vadd.f32 %v1044_v47, %v1882_v56 }
 0x495   : > { %v1029_v61 = vmul.f32 %v1886_v37, %v1886_v37  ;;  %v1030_v7 = vmul.f32 %v1890_v36, %v1890_v36  ;;  %v1059_v21 = vmul.f32 0.7978846, %v1051_v54  ;;  %v1060_v15 = vmul.f32 0.7978846, %v1052_v63 }
 0x497   : > { %v1037_v40 = vmul.f32 %v1029_v61, %v1886_v37  ;;  %v1038_v48 = vmul.f32 %v1030_v7, %v1890_v36  ;;  %1376 = vtanh.f32 %v1059_v21 }
 0x498   : > { %1378 = vtanh.f32 %v1060_v15 }
 0x499   : > { %v1045_v55 = vmul.f32 0.044715, %v1037_v40  ;;  %v1046_v2 = vmul.f32 0.044715, %v1038_v48 }
 0x49a   : > { %v992_v45 = vpop.f32.mrf.mxu2  ;;  %v1021_v52 = vpop.f32.mrf.mxu3 }
 0x49b   : > { %v1898_v46 = vadd.f32 %v992_v45, %v954_v4  ;;  %v1900_v39 = vadd.f32 %v1021_v52, %v954_v4  ;;  %v1053_v17 = vadd.f32 %v1045_v55, %v1886_v37  ;;  %v1054_v22 = vadd.f32 %v1046_v2, %v1890_v36 }
 0x49d   : > { %v1031_v43 = vmul.f32 %v1898_v46, %v1898_v46  ;;  %v1032_v44 = vmul.f32 %v1900_v39, %v1900_v39  ;;  %v1061_v14 = vmul.f32 0.7978846, %v1053_v17  ;;  %v1062_v29 = vmul.f32 0.7978846, %v1054_v22  ;;  %v1377_v32 = vpop.eup %1376 }
 0x49e   : > { %v1075_v52 = vadd.f32 1.0, %v1377_v32 }
 0x49f   : > { %v1039_v53 = vmul.f32 %v1031_v43, %v1898_v46  ;;  %v1040_v1 = vmul.f32 %v1032_v44, %v1900_v39 }
 0x4a0   : > { %v1083_v54 = vmul.f32 0.5, %v1075_v52 }
 0x4a1   : > { %v1047_v59 = vmul.f32 0.044715, %v1039_v53  ;;  %v1048_v62 = vmul.f32 0.044715, %v1040_v1 }
 0x4a2   : > { %v995_v3 = vpop.f32.mrf.mxu2  ;;  %v1024_v6 = vpop.f32.mrf.mxu3  ;;  %v1091_v2 = vmul.f32 %v1083_v54, %v1880_v10 }
 0x4a3   : > { %v1055_v11 = vadd.f32 %v1047_v59, %v1898_v46  ;;  %v996_v9 = vadd.f32 %v995_v3, %v959_v51  ;;  %v1025_v13 = vadd.f32 %v1024_v6, %v959_v51  ;;  %v1056_v16 = vadd.f32 %v1048_v62, %v1900_v39  ;;  %v1379_v51 = vpop.eup %1378 }
 0x4a4   : > { %v1076_v43 = vadd.f32 1.0, %v1379_v51 }
 0x4a5   : > { %v1033_v18 = vmul.f32 %v996_v9, %v996_v9  ;;  %v1034_v20 = vmul.f32 %v1025_v13, %v1025_v13  ;;  %v1063_v28 = vmul.f32 0.7978846, %v1055_v11  ;;  %v1064_v57 = vmul.f32 0.7978846, %v1056_v16 }
 0x4a6   : > { %v1084_v59 = vmul.f32 0.5, %v1076_v43 }
 0x4a7   : > { %v1041_v23 = vmul.f32 %v1033_v18, %v996_v9  ;;  %v1042_v27 = vmul.f32 %v1034_v20, %v1025_v13  ;;  %1380 = vtanh.f32 %v1063_v28 }
 0x4a8   : > { %1382 = vtanh.f32 %v1064_v57  ;;  %v1092_v3 = vmul.f32 %v1084_v59, %v1882_v56 }
 0x4a9   : > { %v1049_v0 = vmul.f32 0.044715, %v1041_v23  ;;  %v1050_v42 = vmul.f32 0.044715, %v1042_v27  ;;  %1384 = vtanh.f32 %v1061_v14 }
 0x4aa   : > { %1386 = vtanh.f32 %v1062_v29 }
 0x4ab   : > { %v1057_v30 = vadd.f32 %v1049_v0, %v996_v9  ;;  %v1058_v25 = vadd.f32 %v1050_v42, %v1025_v13 }
 0x4ad   : > { %v1065_v5 = vmul.f32 0.7978846, %v1057_v30  ;;  %v1066_v34 = vmul.f32 0.7978846, %v1058_v25  ;;  %v1381_v19 = vpop.eup %1380 }
 0x4ae   : > { %v1383_v33 = vpop.eup %1382  ;;  %v1079_v58 = vadd.f32 1.0, %v1381_v19 }
 0x4af   : > { %1388 = vtanh.f32 %v1065_v5  ;;  %v1385_v8 = vpop.eup %1384  ;;  %v1080_v31 = vadd.f32 1.0, %v1383_v33 }
 0x4b0   : > { %1390 = vtanh.f32 %v1066_v34  ;;  %v1387_v26 = vpop.eup %1386  ;;  %v1077_v24 = vadd.f32 1.0, %v1385_v8  ;;  %v1087_v45 = vmul.f32 0.5, %v1079_v58 }
 0x4b1   : > { %v1078_v41 = vadd.f32 1.0, %v1387_v26  ;;  %v1088_v40 = vmul.f32 0.5, %v1080_v31 }
 0x4b2   : > { %v1085_v47 = vmul.f32 0.5, %v1077_v24  ;;  %v1095_v1 = vmul.f32 %v1087_v45, %v1898_v46 }
 0x4b3   : > { %v1086_v53 = vmul.f32 0.5, %v1078_v41  ;;  %v1096_v55 = vmul.f32 %v1088_v40, %v1900_v39 }
 0x4b4   : > { %v1093_v62 = vmul.f32 %v1085_v47, %v1886_v37 }
 0x4b5   : > { %v1389_v35 = vpop.eup %1388  ;;  %v1094_v63 = vmul.f32 %v1086_v53, %v1890_v36 }
 0x4b6   : > { %v1391_v49 = vpop.eup %1390  ;;  %v1081_v4 = vadd.f32 1.0, %v1389_v35 }
 0x4b7   : > { %v1082_v61 = vadd.f32 1.0, %v1391_v49 }
 0x4b8   : > { %v1089_v7 = vmul.f32 0.5, %v1081_v4 }
 0x4b9   : > { %v1090_v12 = vmul.f32 0.5, %v1082_v61 }
 0x4ba   : > { %v1097_v44 = vmul.f32 %v1089_v7, %v996_v9 }
 0x4bb   : > { %v1098_v48 = vmul.f32 %v1090_v12, %v1025_v13 }
 0x4bc   : > { %1111 = vmatpush.msrb.mxu0 %v1097_v44 }
 0x4bd   : > { %1131 = vmatpush.msrb.mxu1 %v1098_v48 }
 0x4be   : > { %1112 = vmatpush.msrb.mxu0 %v1095_v1 }
 0x4bf   : > { %1132 = vmatpush.msrb.mxu1 %v1096_v55 }
 0x4c0   : > { %1113 = vmatpush.msrb.mxu0 %v1093_v62 }
 0x4c1   : > { %1133 = vmatpush.msrb.mxu1 %v1094_v63 }
 0x4c2   : > { %1114 = vmatpush.msrb.mxu0 %v1091_v2 }
 0x4c3   : > { %1134 = vmatpush.msrb.mxu1 %v1092_v3  ;;  %1277 = vmatmul.msk.f32.vlgmr.msrb.gmra.mxu0 %vm453_vm2, %v1703_v60 }
 0x4c4   : > { %1278 = vmatmul.msk.f32.vlgmr.msrb.gmra.mxu1 %vm453_vm2, %v1703_v60 }
 0x540   : > { %v1116_v46 = vpop.f32.mrf.mxu0 }
 0x541   : > { %v1136_v37 = vpop.f32.mrf.mxu1  ;;  %v1117_v36 = vadd.f32 %v1116_v46, %v1711_v50 }
 0x542   : > { %v1137_v10 = vadd.f32 %v1136_v37, %v1711_v50 }
 0x543   : > { %v1139_v39 = vmul.f32 0.00030764195, %v1117_v36 }
 0x544   : > { %v1140_v56 = vmul.f32 0.00030764195, %v1137_v10 }
 0x546   : > { %v1143_v6 = vrot.slane %v1140_v56, 4 }
 0x548   : > { %v1144_v60 = vsel %vm313_vm0, %v1139_v39, %v1143_v6 }
 0x549   : > { %v1146_v11 = vadd.f32 %v1144_v60, %v1859_v38 }
 0x54b   : > { %1147 = vst [vmem:[%s245_s18] sm:$0xff] %v1146_v11 }
 0x54c   : > { %1419 = shalt.err (!%p1416_p3)
}
 0x54d   : > { %1285 = dma.vmem_to_hbm [thread:$0]  (%p1530_p5), %s1163_s19, 128, %s1165_s20, %s1149_s25  }
 0x54e PF: > { %p1291_p4 = scmp.ge.s32.totalorder %s1454_s24, 2  ;;  %s1176_s12 = sand.u32 1, %s1442_s21  }
 0x54f   : > { %s1177_s15 = scalar_lea.sflag [#allocation3], %s1176_s12 }
 0x550   : > { %p1288_p7 = pnand %p1291_p4, %p1534_p6 }
 0x552   : > { %p1289_p8 = pneg %p1288_p7 }
 0x554   : > { %1437 = dma.done.wait (%p1289_p8), %s1177_s15, 128  }
 0x555   : > { %1439 = vsyncadd (%p1289_p8), %s1177_s15, 4294967168  ;;  %p16_p9 = scmp.ge.s32.totalorder %s1517_s27, 4   ;;  %s1971_s21 = smov %s1446_s22 }
 0x556   : > { %s1972_s22 = smov %s1450_s23  ;;  %s1973_s23 = smov %s1528_s30 }
 0x557   : > { %s1974_s24 = smov %s1517_s27  ;;  %18 = sbr.rel (!%p16_p9) target bundleno = 3 (0x3), region = 79 }
 0x55c   :  { %1183 = vsyncpa [#allocation3], 1 }
 0x55d   :  { %1185 = vsyncpa [#allocation3 + $0x1], 1 }

</bundles_post_ra>
